<compile_context>
chip_gen: v6e
topology: v6e:2x2x1
jax: 0.10.0
libtpu: 0.0.40
codegen_flags: <defaults>
</compile_context>

<pallas_src>
import functools

import numpy as np
import jax
import jax.numpy as jnp
from jax.experimental import pallas as pl
from jax.experimental.pallas import tpu as pltpu


def _round_up(v, m):
    return (v + m - 1) // m * m


def _softplus(x):
    # matches torch.nn.functional.softplus (beta=1, threshold=20)
    return jnp.where(x > 20.0, x, jnp.log1p(jnp.exp(jnp.minimum(x, 20.0))))


def _param_pred_kernel(x_ref, w_ref, b_ref, db_ref, er_ref, ec_ref, eye_ref,
                       out_ref, *, gaussian_num, action_dim, out_width):
    G, A = gaussian_num, action_dim
    ts = A * (A + 1) // 2
    GAA = G * A * A
    n = x_ref.shape[0]

    # ---- fused linear: [pi | mu | chol] in a single MXU push ----
    h = jnp.dot(x_ref[...], w_ref[...],
                preferred_element_type=jnp.float32) + b_ref[...]
    logits = h[:, :G]
    mu = h[:, G:G + G * A]
    chol = h[:, G + G * A:]                              # (n, G*ts) f32

    # ---- pi head: softmax, divide routed to EUP via approx reciprocal ----
    m = jnp.max(logits, axis=-1, keepdims=True)
    e = jnp.exp(logits - m)
    pi = e * pl.reciprocal(jnp.sum(e, axis=-1, keepdims=True), approx=True)

    # ---- full-width transcendentals for the cholesky factors ----
    # (first A columns of each gaussian block feed the diagonal via softplus;
    #  the same columns may also feed strict-lower entries via tanh -- this
    #  overlap matches the PyTorch semantics, it is intentional.)
    sp = _softplus(chol + db_ref[...]) + 0.1             # diag sources
    t = jnp.tanh(chol) * 0.1                             # strict-lower sources
    src = jnp.concatenate([sp, t], axis=-1)              # (n, 2*G*ts)

    # ---- cov = L L^T + 1e-5 I, fully vectorized ----
    # For each k, er_ref[k]/ec_ref[k] are static 0/1 expansion matrices that
    # broadcast L[:, g, i, k] / L[:, g, j, k] over the (g, i, j) cov lane
    # layout; cov is then A full-width multiply-adds (no narrow slices, no
    # masked single-lane stores).
    cov = eye_ref[...]                                   # (1, GAA), broadcasts
    for k in range(A):
        rk = jnp.dot(src, er_ref[k], preferred_element_type=jnp.float32)
        ck = jnp.dot(src, ec_ref[k], preferred_element_type=jnp.float32)
        cov = cov + rk * ck

    # ---- single lane-dense packed store: [pi | mu | cov | zero pad] ----
    pad = out_ref.shape[1] - out_width
    parts = [pi, mu, cov]
    if pad > 0:
        parts.append(jnp.zeros((n, pad), jnp.float32))
    out_ref[...] = jnp.concatenate(parts, axis=-1).astype(out_ref.dtype)


def prepare_parameters(params, *, gaussian_num, action_dim):
    """Fuse the three heads and build static expansion tensors (call ONCE)."""
    G, A = gaussian_num, action_dim
    ts = A * (A + 1) // 2
    GAA = G * A * A

    w = jnp.concatenate([params["wpi"], params["wmu"], params["wch"]], axis=1)
    b = jnp.concatenate(
        [params["bpi"], params["bmu"], params["bch"]]
    ).astype(jnp.float32).reshape(1, -1)
    # diag_bias scattered into tril order (first A slots of each gaussian block)
    db = (jnp.zeros((G, ts), jnp.float32)
          .at[:, :A].set(params["diag_bias"].astype(jnp.float32))
          .reshape(1, G * ts))

    # Static 0/1 expansion tensors.  src = [softplus | tanh] columns (2*G*ts).
    #   er[k][:, g*A*A + i*A + j] selects L[g, i, k]
    #   ec[k][:, g*A*A + i*A + j] selects L[g, j, k]
    er = np.zeros((A, 2 * G * ts, GAA), np.float32)
    ec = np.zeros((A, 2 * G * ts, GAA), np.float32)
    for g in range(G):
        for i in range(A):
            for j in range(A):
                dst = g * A * A + i * A + j
                for k in range(A):
                    if k == i:
                        er[k, g * ts + k, dst] = 1.0
                    elif k < i:
                        er[k, G * ts + g * ts + i * (i + 1) // 2 + k, dst] = 1.0
                    if k == j:
                        ec[k, g * ts + k, dst] = 1.0
                    elif k < j:
                        ec[k, G * ts + g * ts + j * (j + 1) // 2 + k, dst] = 1.0
    eye = np.zeros((1, GAA), np.float32)
    for g in range(G):
        for i in range(A):
            eye[0, g * A * A + i * A + i] = 1e-5

    return {"w": w, "b": b, "db": db,
            "er": jnp.asarray(er), "ec": jnp.asarray(ec),
            "eye": jnp.asarray(eye)}


def parameter_prediction_forward(hidden_states, fused, *, gaussian_num,
                                 action_dim, tile_n=1024):
    B, T, H = hidden_states.shape
    G, A = gaussian_num, action_dim
    ts = A * (A + 1) // 2
    GAA = G * A * A
    d_lin = G + G * A + G * ts           # fused matmul output width
    d_out = G + G * A + GAA              # packed output width (pi | mu | cov)
    d_pad = _round_up(d_out, 128)        # lane-dense output slab width

    # Feed the MXU in the activation's native dtype (bf16 stays bf16); the
    # epilogue / accumulation are always f32.
    x_dtype = hidden_states.dtype
    if x_dtype not in (jnp.bfloat16, jnp.float32):
        x_dtype = jnp.float32
    x = hidden_states[:, :-1, :].reshape(B * (T - 1), H).astype(x_dtype)
    w = fused["w"].astype(x_dtype)
    N = x.shape[0]
    x_bytes = 2 if x_dtype == jnp.bfloat16 else 4

    # Row tiling: large tiles amortize the ~0.35us per-grid-step cost; shrink
    # the tile if the double-buffered footprint would exceed ~24 MiB (v7x has
    # 64 MiB physical VMEM and 2 TCs).
    tile_n = min(tile_n, _round_up(N, 8))

    def vmem_estimate(t):
        return (2 * t * H * x_bytes                # x, double-buffered
                + 2 * t * d_pad * 4                # out, double-buffered
                + H * d_lin * x_bytes              # resident fused weight
                + 2 * A * (2 * G * ts) * GAA * 4   # expansion tensors
                + (d_lin + G * ts + GAA) * 4)      # biases / eye

    while tile_n > 256 and vmem_estimate(tile_n) > 24 * 1024 * 1024:
        tile_n //= 2

    n_pad = _round_up(N, tile_n)
    if n_pad != N:
        x = jnp.pad(x, ((0, n_pad - N), (0, 0)))

    vmem_limit = min(max(2 * vmem_estimate(tile_n), 16 * 1024 * 1024),
                     64 * 1024 * 1024)

    kernel = functools.partial(_param_pred_kernel, gaussian_num=G,
                               action_dim=A, out_width=d_out)

    def resident(shape):
        rank = len(shape)
        return pl.BlockSpec(shape, lambda i, _r=rank: (0,) * _r)

    out = pl.pallas_call(
        kernel,
        out_shape=jax.ShapeDtypeStruct((n_pad, d_pad), jnp.float32),
        grid=(n_pad // tile_n,),
        in_specs=[
            pl.BlockSpec((tile_n, H), lambda i: (i, 0)),   # activations, row-tiled
            resident((H, d_lin)),                          # fused weight (resident)
            resident((1, d_lin)),                          # fused bias
            resident((1, G * ts)),                         # diag bias (tril order)
            resident((A, 2 * G * ts, GAA)),                # row-operand expansion
            resident((A, 2 * G * ts, GAA)),                # col-operand expansion
            resident((1, GAA)),                            # 1e-5 * I, flattened
        ],
        out_specs=pl.BlockSpec((tile_n, d_pad), lambda i: (i, 0)),
        compiler_params=pltpu.CompilerParams(
            dimension_semantics=("parallel",),
            vmem_limit_bytes=vmem_limit,
        ),
    )(x, w, fused["b"], fused["db"], fused["er"], fused["ec"], fused["eye"])

    out = out[:N]
    pi = out[:, :G].reshape(B, T - 1, G)
    mu = out[:, G:G + G * A].reshape(B, T - 1, G, A)
    cov = out[:, G + G * A:d_out].reshape(B, T - 1, G, A, A)
    return pi, mu, cov


def reference_forward(hidden_states, params, *, gaussian_num, action_dim):
    """Pure-JAX reference mirroring the PyTorch forward."""
    G, A = gaussian_num, action_dim
    ts = A * (A + 1) // 2
    x = hidden_states[:, :-1, :].astype(jnp.float32)
    B, S, H = x.shape
    pi = jax.nn.softmax(x @ params["wpi"] + params["bpi"], axis=-1)
    mu = (x @ params["wmu"] + params["bmu"]).reshape(B, S, G, A)
    chol = (x @ params["wch"] + params["bch"]).reshape(B, S, G, ts)
    L = jnp.zeros((B, S, G, A, A), jnp.float32)
    for r in range(A):
        for c in range(r):
            p = r * (r + 1) // 2 + c
            L = L.at[..., r, c].set(jnp.tanh(chol[..., p]) * 0.1)
    diag_vals = jax.nn.softplus(chol[..., :A] + params["diag_bias"][None, None]) + 0.1
    for i in range(A):
        L = L.at[..., i, i].set(diag_vals[..., i])
    cov = L @ jnp.swapaxes(L, -1, -2) + jnp.eye(A, dtype=jnp.float32) * 1e-5
    return pi, mu, cov


if __name__ == "__main__":
    # Small shapes consistent with the module's forward.
    B, T, H = 2, 9, 32          # N = B*(T-1) = 16
    G, A = 4, 3                 # gaussian_num, action_dim
    ts = A * (A + 1) // 2

    key = jax.random.PRNGKey(0)
    ks = jax.random.split(key, 7)
    bound = 1.0 / jnp.sqrt(H)
    params = {
        "wpi": jax.random.uniform(ks[0], (H, G), jnp.float32, -bound, bound),
        "bpi": jax.random.uniform(ks[1], (G,), jnp.float32, -bound, bound),
        "wmu": jax.random.uniform(ks[2], (H, G * A), jnp.float32, -bound, bound),
        "bmu": jax.random.uniform(ks[3], (G * A,), jnp.float32, -bound, bound),
        "wch": jax.random.uniform(ks[4], (H, G * ts), jnp.float32, -bound, bound),
        "bch": jax.random.uniform(ks[5], (G * ts,), jnp.float32, -bound, bound),
        "diag_bias": jnp.ones((G, A), jnp.float32) * 0.1,
    }
    hidden_states = jax.random.normal(ks[6], (B, T, H), jnp.float32)

    fused = prepare_parameters(params, gaussian_num=G, action_dim=A)
    pi, mu, cov = parameter_prediction_forward(
        hidden_states, fused, gaussian_num=G, action_dim=A, tile_n=1024)
    jax.block_until_ready((pi, mu, cov))

    pi_r, mu_r, cov_r = reference_forward(
        hidden_states, params, gaussian_num=G, action_dim=A)
    assert pi.shape == (B, T - 1, G)
    assert mu.shape == (B, T - 1, G, A)
    assert cov.shape == (B, T - 1, G, A, A)
    assert jnp.allclose(pi, pi_r, rtol=1e-3, atol=1e-3)
    assert jnp.allclose(mu, mu_r, rtol=1e-3, atol=1e-3)
    assert jnp.allclose(cov, cov_r, rtol=1e-3, atol=1e-3)

    print("KERNEL_OK")
</pallas_src>

<mosaic_0001>
module attributes {stable_mosaic.version = 11 : i64} {
  func.func @_param_pred_kernel(%arg0: i32, %arg1: memref<16x32xf32, #tpu.memory_space<vmem>>, %arg2: memref<32x40xf32, #tpu.memory_space<vmem>>, %arg3: memref<1x40xf32, #tpu.memory_space<vmem>>, %arg4: memref<1x24xf32, #tpu.memory_space<vmem>>, %arg5: memref<3x48x36xf32, #tpu.memory_space<vmem>>, %arg6: memref<3x48x36xf32, #tpu.memory_space<vmem>>, %arg7: memref<1x36xf32, #tpu.memory_space<vmem>>, %arg8: memref<16x128xf32, #tpu.memory_space<vmem>>) attributes {dimension_semantics = [#tpu.dimension_semantics<parallel>], iteration_bounds = array<i64: 1>, scalar_prefetch = 0 : i64, scratch_operands = 0 : i64, tpu.core_type = #tpu.core_type<tc>, window_params = [{transform_indices = @transform_0, window_bounds = array<i64: 16, 32>}, {pipeline_mode = #tpu.pipeline_mode<synchronous>, transform_indices = @transform_1, window_bounds = array<i64: 32, 40>}, {pipeline_mode = #tpu.pipeline_mode<synchronous>, transform_indices = @transform_2, window_bounds = array<i64: 1, 40>}, {pipeline_mode = #tpu.pipeline_mode<synchronous>, transform_indices = @transform_3, window_bounds = array<i64: 1, 24>}, {pipeline_mode = #tpu.pipeline_mode<synchronous>, transform_indices = @transform_4, window_bounds = array<i64: 3, 48, 36>}, {pipeline_mode = #tpu.pipeline_mode<synchronous>, transform_indices = @transform_5, window_bounds = array<i64: 3, 48, 36>}, {pipeline_mode = #tpu.pipeline_mode<synchronous>, transform_indices = @transform_6, window_bounds = array<i64: 1, 36>}, {transform_indices = @transform_7, window_bounds = array<i64: 16, 128>}]} {
    %c0 = arith.constant 0 : index
    %c0_0 = arith.constant 0 : index
    %0 = vector.load %arg1[%c0, %c0_0] : memref<16x32xf32, #tpu.memory_space<vmem>>, vector<16x32xf32>
    %c0_1 = arith.constant 0 : index
    %c0_2 = arith.constant 0 : index
    %1 = vector.load %arg2[%c0_1, %c0_2] : memref<32x40xf32, #tpu.memory_space<vmem>>, vector<32x40xf32>
    %cst = arith.constant dense<0.000000e+00> : vector<16x40xf32>
    %2 = tpu.matmul %0, %1, %cst {dimension_numbers = #tpu.dot_dimension_numbers<[1], [0], [0], [1], [0, 0, 1, 1], [], []>} : vector<16x32xf32>, vector<32x40xf32>, vector<16x40xf32> -> vector<16x40xf32>
    %c0_3 = arith.constant 0 : index
    %c0_4 = arith.constant 0 : index
    %3 = vector.load %arg3[%c0_3, %c0_4] : memref<1x40xf32, #tpu.memory_space<vmem>>, vector<1x40xf32>
    %4 = vector.broadcast %3 : vector<1x40xf32> to vector<16x40xf32>
    %5 = arith.addf %2, %4 : vector<16x40xf32>
    %6 = vector.extract_strided_slice %5 {offsets = [0, 0], sizes = [16, 4], strides = [1, 1]} : vector<16x40xf32> to vector<16x4xf32>
    %7 = vector.extract_strided_slice %5 {offsets = [0, 4], sizes = [16, 12], strides = [1, 1]} : vector<16x40xf32> to vector<16x12xf32>
    %8 = vector.extract_strided_slice %5 {offsets = [0, 16], sizes = [16, 24], strides = [1, 1]} : vector<16x40xf32> to vector<16x24xf32>
    %cst_5 = arith.constant dense<0xFF800000> : vector<16xf32>
    %9 = vector.multi_reduction <maximumf>, %6, %cst_5 [1] : vector<16x4xf32> to vector<16xf32>
    %10 = vector.shape_cast %9 : vector<16xf32> to vector<16x1xf32>
    %11 = vector.broadcast %10 : vector<16x1xf32> to vector<16x4xf32>
    %12 = arith.subf %6, %11 : vector<16x4xf32>
    %13 = math.exp %12 : vector<16x4xf32>
    %cst_6 = arith.constant dense<0.000000e+00> : vector<16xf32>
    %14 = vector.multi_reduction <add>, %13, %cst_6 [1] : vector<16x4xf32> to vector<16xf32>
    %15 = vector.shape_cast %14 : vector<16xf32> to vector<16x1xf32>
    %16 = tpu.reciprocal %15 {approx = true} : vector<16x1xf32> -> vector<16x1xf32>
    %17 = vector.broadcast %16 : vector<16x1xf32> to vector<16x4xf32>
    %18 = arith.mulf %13, %17 : vector<16x4xf32>
    %c0_7 = arith.constant 0 : index
    %c0_8 = arith.constant 0 : index
    %19 = vector.load %arg4[%c0_7, %c0_8] : memref<1x24xf32, #tpu.memory_space<vmem>>, vector<1x24xf32>
    %20 = vector.broadcast %19 : vector<1x24xf32> to vector<16x24xf32>
    %21 = arith.addf %8, %20 : vector<16x24xf32>
    %cst_9 = arith.constant 2.000000e+01 : f32
    %22 = vector.broadcast %cst_9 : f32 to vector<16x24xf32>
    %23 = arith.cmpf ogt, %21, %22 : vector<16x24xf32>
    %cst_10 = arith.constant 2.000000e+01 : f32
    %24 = vector.broadcast %cst_10 : f32 to vector<16x24xf32>
    %25 = arith.minimumf %21, %24 : vector<16x24xf32>
    %26 = math.exp %25 : vector<16x24xf32>
    %27 = math.log1p %26 : vector<16x24xf32>
    %28 = arith.select %23, %21, %27 : vector<16x24xi1>, vector<16x24xf32>
    %cst_11 = arith.constant 1.000000e-01 : f32
    %29 = vector.broadcast %cst_11 : f32 to vector<16x24xf32>
    %30 = arith.addf %28, %29 : vector<16x24xf32>
    %31 = math.tanh %8 : vector<16x24xf32>
    %cst_12 = arith.constant 1.000000e-01 : f32
    %32 = vector.broadcast %cst_12 : f32 to vector<16x24xf32>
    %33 = arith.mulf %31, %32 : vector<16x24xf32>
    %34 = tpu.concatenate %30, %33 in 1 : vector<16x24xf32>, vector<16x24xf32> -> vector<16x48xf32>
    %c0_13 = arith.constant 0 : index
    %c0_14 = arith.constant 0 : index
    %35 = vector.load %arg7[%c0_13, %c0_14] : memref<1x36xf32, #tpu.memory_space<vmem>>, vector<1x36xf32>
    %c0_15 = arith.constant 0 : index
    %c0_16 = arith.constant 0 : index
    %c0_17 = arith.constant 0 : index
    %36 = vector.load %arg5[%c0_15, %c0_16, %c0_17] : memref<3x48x36xf32, #tpu.memory_space<vmem>>, vector<1x48x36xf32>
    %37 = vector.shape_cast %36 : vector<1x48x36xf32> to vector<48x36xf32>
    %cst_18 = arith.constant dense<0.000000e+00> : vector<16x36xf32>
    %38 = tpu.matmul %34, %37, %cst_18 {dimension_numbers = #tpu.dot_dimension_numbers<[1], [0], [0], [1], [0, 0, 1, 1], [], []>} : vector<16x48xf32>, vector<48x36xf32>, vector<16x36xf32> -> vector<16x36xf32>
    %c0_19 = arith.constant 0 : index
    %c0_20 = arith.constant 0 : index
    %c0_21 = arith.constant 0 : index
    %39 = vector.load %arg6[%c0_19, %c0_20, %c0_21] : memref<3x48x36xf32, #tpu.memory_space<vmem>>, vector<1x48x36xf32>
    %40 = vector.shape_cast %39 : vector<1x48x36xf32> to vector<48x36xf32>
    %cst_22 = arith.constant dense<0.000000e+00> : vector<16x36xf32>
    %41 = tpu.matmul %34, %40, %cst_22 {dimension_numbers = #tpu.dot_dimension_numbers<[1], [0], [0], [1], [0, 0, 1, 1], [], []>} : vector<16x48xf32>, vector<48x36xf32>, vector<16x36xf32> -> vector<16x36xf32>
    %42 = arith.mulf %38, %41 : vector<16x36xf32>
    %43 = vector.broadcast %35 : vector<1x36xf32> to vector<16x36xf32>
    %44 = arith.addf %43, %42 : vector<16x36xf32>
    %c1 = arith.constant 1 : index
    %c0_23 = arith.constant 0 : index
    %c0_24 = arith.constant 0 : index
    %45 = vector.load %arg5[%c1, %c0_23, %c0_24] : memref<3x48x36xf32, #tpu.memory_space<vmem>>, vector<1x48x36xf32>
    %46 = vector.shape_cast %45 : vector<1x48x36xf32> to vector<48x36xf32>
    %cst_25 = arith.constant dense<0.000000e+00> : vector<16x36xf32>
    %47 = tpu.matmul %34, %46, %cst_25 {dimension_numbers = #tpu.dot_dimension_numbers<[1], [0], [0], [1], [0, 0, 1, 1], [], []>} : vector<16x48xf32>, vector<48x36xf32>, vector<16x36xf32> -> vector<16x36xf32>
    %c1_26 = arith.constant 1 : index
    %c0_27 = arith.constant 0 : index
    %c0_28 = arith.constant 0 : index
    %48 = vector.load %arg6[%c1_26, %c0_27, %c0_28] : memref<3x48x36xf32, #tpu.memory_space<vmem>>, vector<1x48x36xf32>
    %49 = vector.shape_cast %48 : vector<1x48x36xf32> to vector<48x36xf32>
    %cst_29 = arith.constant dense<0.000000e+00> : vector<16x36xf32>
    %50 = tpu.matmul %34, %49, %cst_29 {dimension_numbers = #tpu.dot_dimension_numbers<[1], [0], [0], [1], [0, 0, 1, 1], [], []>} : vector<16x48xf32>, vector<48x36xf32>, vector<16x36xf32> -> vector<16x36xf32>
    %51 = arith.mulf %47, %50 : vector<16x36xf32>
    %52 = arith.addf %44, %51 : vector<16x36xf32>
    %c2 = arith.constant 2 : index
    %c0_30 = arith.constant 0 : index
    %c0_31 = arith.constant 0 : index
    %53 = vector.load %arg5[%c2, %c0_30, %c0_31] : memref<3x48x36xf32, #tpu.memory_space<vmem>>, vector<1x48x36xf32>
    %54 = vector.shape_cast %53 : vector<1x48x36xf32> to vector<48x36xf32>
    %cst_32 = arith.constant dense<0.000000e+00> : vector<16x36xf32>
    %55 = tpu.matmul %34, %54, %cst_32 {dimension_numbers = #tpu.dot_dimension_numbers<[1], [0], [0], [1], [0, 0, 1, 1], [], []>} : vector<16x48xf32>, vector<48x36xf32>, vector<16x36xf32> -> vector<16x36xf32>
    %c2_33 = arith.constant 2 : index
    %c0_34 = arith.constant 0 : index
    %c0_35 = arith.constant 0 : index
    %56 = vector.load %arg6[%c2_33, %c0_34, %c0_35] : memref<3x48x36xf32, #tpu.memory_space<vmem>>, vector<1x48x36xf32>
    %57 = vector.shape_cast %56 : vector<1x48x36xf32> to vector<48x36xf32>
    %cst_36 = arith.constant dense<0.000000e+00> : vector<16x36xf32>
    %58 = tpu.matmul %34, %57, %cst_36 {dimension_numbers = #tpu.dot_dimension_numbers<[1], [0], [0], [1], [0, 0, 1, 1], [], []>} : vector<16x48xf32>, vector<48x36xf32>, vector<16x36xf32> -> vector<16x36xf32>
    %59 = arith.mulf %55, %58 : vector<16x36xf32>
    %60 = arith.addf %52, %59 : vector<16x36xf32>
    %cst_37 = arith.constant 0.000000e+00 : f32
    %61 = vector.broadcast %cst_37 : f32 to vector<16x76xf32>
    %62 = tpu.concatenate %18, %7, %60, %61 in 1 : vector<16x4xf32>, vector<16x12xf32>, vector<16x36xf32>, vector<16x76xf32> -> vector<16x128xf32>
    %c0_38 = arith.constant 0 : index
    %c0_39 = arith.constant 0 : index
    %63 = vector.load %arg8[%c0_38, %c0_39] : memref<16x128xf32, #tpu.memory_space<vmem>>, vector<16x128xf32>
    tpu.vector_store %arg8[%c0_38, %c0_39], %62 {strides = array<i32>} : memref<16x128xf32, #tpu.memory_space<vmem>>, vector<16x128xf32>,
    return
  }
  func.func @transform_0(%arg0: i32) -> (i32, i32) {
    %c0_i32 = arith.constant 0 : i32
    %c0_i32_0 = arith.constant 0 : i32
    return %arg0, %c0_i32 : i32, i32
  }
  func.func @transform_1(%arg0: i32) -> (i32, i32) {
    %c0_i32 = arith.constant 0 : i32
    %c0_i32_0 = arith.constant 0 : i32
    %c0_i32_1 = arith.constant 0 : i32
    return %c0_i32, %c0_i32_0 : i32, i32
  }
  func.func @transform_2(%arg0: i32) -> (i32, i32) {
    %c0_i32 = arith.constant 0 : i32
    %c0_i32_0 = arith.constant 0 : i32
    %c0_i32_1 = arith.constant 0 : i32
    return %c0_i32, %c0_i32_0 : i32, i32
  }
  func.func @transform_3(%arg0: i32) -> (i32, i32) {
    %c0_i32 = arith.constant 0 : i32
    %c0_i32_0 = arith.constant 0 : i32
    %c0_i32_1 = arith.constant 0 : i32
    return %c0_i32, %c0_i32_0 : i32, i32
  }
  func.func @transform_4(%arg0: i32) -> (i32, i32, i32) {
    %c0_i32 = arith.constant 0 : i32
    %c0_i32_0 = arith.constant 0 : i32
    %c0_i32_1 = arith.constant 0 : i32
    %c0_i32_2 = arith.constant 0 : i32
    return %c0_i32, %c0_i32_0, %c0_i32_1 : i32, i32, i32
  }
  func.func @transform_5(%arg0: i32) -> (i32, i32, i32) {
    %c0_i32 = arith.constant 0 : i32
    %c0_i32_0 = arith.constant 0 : i32
    %c0_i32_1 = arith.constant 0 : i32
    %c0_i32_2 = arith.constant 0 : i32
    return %c0_i32, %c0_i32_0, %c0_i32_1 : i32, i32, i32
  }
  func.func @transform_6(%arg0: i32) -> (i32, i32) {
    %c0_i32 = arith.constant 0 : i32
    %c0_i32_0 = arith.constant 0 : i32
    %c0_i32_1 = arith.constant 0 : i32
    return %c0_i32, %c0_i32_0 : i32, i32
  }
  func.func @transform_7(%arg0: i32) -> (i32, i32) {
    %c0_i32 = arith.constant 0 : i32
    %c0_i32_0 = arith.constant 0 : i32
    return %arg0, %c0_i32 : i32, i32
  }
}

</mosaic_0001>

<bundles_post_ra>
// kernel: tpu_custom_call.1
= control target key start
LH: loop header
LB: loop body
LE: loop exit
PB: predicated region body
PF: predicated region fallthrough
CT: control target
= control target key end

     0   :  { %vm40_vm0 = vcmask 261120   ;;  %s1243_s0 = inlined_call_operand.vmem [shape: f32[16,32], index: 0, kind: input, shape index: {}]   ;;  %s1244_s1 = inlined_call_operand.vmem [shape: f32[32,40], index: 1, kind: input, shape index: {}]   ;;  %s1245_s2 = inlined_call_operand.vmem [shape: f32[1,40], index: 2, kind: input, shape index: {}]   ;;  %s1246_s3 = inlined_call_operand.vmem [shape: f32[1,24], index: 3, kind: input, shape index: {}]   ;;  %s1247_s4 = inlined_call_operand.vmem [shape: f32[3,48,36], index: 4, kind: input, shape index: {}]   ;;  %s1248_s5 = inlined_call_operand.vmem [shape: f32[3,48,36], index: 5, kind: input, shape index: {}]   ;;  %s1249_s6 = inlined_call_operand.vmem [shape: f32[1,36], index: 6, kind: input, shape index: {}]   ;;  %s1250_s7 = inlined_call_operand.hbm [shape: f32[16,128], index: 7, kind: output, shape index: {}]  }
   0x1   :  { %v32_v0 = vld [vmem:[%s1244_s1 + $0x18] sm:$0xff]  ;;  %v31_v1 = vld [vmem:[%s1244_s1 + $0x10] sm:$0xff]  ;;  %v27_v2 = vld [vmem:[%s1243_s0] sm:$0xff] }
   0x2   :  { %854 = vmatprep.subr.mxu0 %v32_v0  ;;  %v30_v3 = vld [vmem:[%s1244_s1 + $0x8] sm:$0xff]  ;;  %862 = vmatprep.mubr.msk.f32.mxu0 %vm40_vm0, %v27_v2  ;;  %v762_v4 = vld [vmem:[%s1246_s3] ss:$0 sm:$0xff] }
   0x3   :  { %855 = vmatpush3.msra.mxu0 %v32_v0 }
   0x4   :  { %12 = vsyncpa [#allocation3], 0  ;;  %856 = vmatprep.subr.mxu0 %v31_v1  ;;  %s1002_s11 = smov 16   ;;  %v29_v5 = vld [vmem:[%s1244_s1] sm:$0xff]  ;;  %v28_v6 = vld [vmem:[%s1243_s0 + $0x8] sm:$0xff]  ;;  %s1003_s26 = smov 8  }
   0x5   :  { %151 = vrot.lane.b32.xlu0 %v762_v4, %s1002_s11  ;;  %857 = vmatpush3.msra.mxu0 %v31_v1  ;;  %v759_v7 = vld [vmem:[%s1245_s2] ss:$0 sm:$0xff]  ;;  %v215_v18 = vld [vmem:[%s1247_s4 + $0x28] sm:$0xff]  ;;  %v213_v23 = vld [vmem:[%s1247_s4 + $0x18] sm:$0xff]  ;;  %s1004_s17 = smov 112   ;;  %vm122_vm5 = vcmask 31744  }
   0x6   :  { %858 = vmatprep.subr.mxu0 %v30_v3  ;;  %v303_v19 = vld [vmem:[%s1248_s5 + $0x28] sm:$0xff]  ;;  %865 = vmatprep.subr.mxu1 %v215_v18  ;;  %v214_v20 = vld [vmem:[%s1247_s4 + $0x20] sm:$0xff]  ;;  %v301_v24 = vld [vmem:[%s1248_s5 + $0x18] sm:$0xff]  ;;  %vm206_vm6 = vcmask 195584   ;;  %vm216_vm7 = vcmask 392192   ;;  %vm735_vm8 = vcmask 130048  }
   0x7   :  { %859 = vmatpush3.msra.mxu0 %v30_v3  ;;  %v302_v21 = vld [vmem:[%s1248_s5 + $0x20] sm:$0xff]  ;;  %866 = vmatpush3.msra.mxu1 %v215_v18  ;;  %v212_v32 = vld [vmem:[%s1247_s4 + $0x10] sm:$0xff]  ;;  %v211_v35 = vld [vmem:[%s1247_s4 + $0x8] sm:$0xff]  ;;  %vm738_vm9 = vcmask 424960  }
   0x8   :  { %860 = vmatprep.subr.mxu0 %v29_v5  ;;  %867 = vmatprep.subr.mxu1 %v214_v20  ;;  %v300_v33 = vld [vmem:[%s1248_s5 + $0x10] sm:$0xff]  ;;  %v299_v36 = vld [vmem:[%s1248_s5 + $0x8] sm:$0xff]  ;;  %v210_v38 = vld [vmem:[%s1247_s4] sm:$0xff] }
   0x9   :  { %861 = vmatpush3.msra.mxu0 %v29_v5  ;;  %868 = vmatpush3.msra.mxu1 %v214_v20  ;;  %v298_v39 = vld [vmem:[%s1248_s5] sm:$0xff]  ;;  %v773_v44 = vld [vmem:[%s1247_s4 + $0x58] sm:$0xff]  ;;  %v772_v3 = vld [vmem:[%s1247_s4 + $0x50] sm:$0xff] }
   0xa   :  { %863 = vmatmul.mubr.msk.f32.vlgmr.msra.gmra.mxu0 %vm40_vm0, %v28_v6  ;;  %880 = vmatprep.subr.mxu0 %v303_v19  ;;  %v781_v45 = vld [vmem:[%s1248_s5 + $0x58] sm:$0xff]  ;;  %v780_v4 = vld [vmem:[%s1248_s5 + $0x50] sm:$0xff]  ;;  %v771_v5 = vld [vmem:[%s1247_s4 + $0x48] sm:$0xff] }
   0xb   :  { %881 = vmatpush3.msra.mxu0 %v303_v19  ;;  %869 = vmatprep.subr.mxu1 %v213_v23  ;;  %v779_v6 = vld [vmem:[%s1248_s5 + $0x48] sm:$0xff]  ;;  %v796_v18 = vld [vmem:[%s1248_s5 + $0x80] sm:$0xff]  ;;  %v787_v19 = vld [vmem:[%s1247_s4 + $0x78] sm:$0xff] }
   0xc   :  { %882 = vmatprep.subr.mxu0 %v302_v21  ;;  %870 = vmatpush3.msra.mxu1 %v213_v23  ;;  %v795_v20 = vld [vmem:[%s1248_s5 + $0x78] sm:$0xff]  ;;  %v785_v23 = vld [vmem:[%s1247_s4 + $0x68] sm:$0xff] }
   0xd   :  { %883 = vmatpush3.msra.mxu0 %v302_v21  ;;  %871 = vmatprep.subr.mxu1 %v212_v32  ;;  %v786_v21 = vld [vmem:[%s1247_s4 + $0x70] sm:$0xff] }
   0xe   :  { %884 = vmatprep.subr.mxu0 %v301_v24  ;;  %872 = vmatpush3.msra.mxu1 %v212_v32 }
   0xf   :  { %885 = vmatpush3.msra.mxu0 %v301_v24  ;;  %873 = vmatprep.subr.mxu1 %v211_v35  ;;  %v793_v24 = vld [vmem:[%s1248_s5 + $0x68] sm:$0xff] }
  0x10   :  { %886 = vmatprep.subr.mxu0 %v300_v33  ;;  %874 = vmatpush3.msra.mxu1 %v211_v35 }
  0x11   :  { %887 = vmatpush3.msra.mxu0 %v300_v33  ;;  %875 = vmatprep.subr.mxu1 %v210_v38 }
  0x12   :  { %888 = vmatprep.subr.mxu0 %v299_v36  ;;  %876 = vmatpush3.msra.mxu1 %v210_v38 }
  0x13   :  { %889 = vmatpush3.msra.mxu0 %v299_v36  ;;  %895 = vmatprep.subr.mxu1 %v773_v44 }
  0x14   :  { %890 = vmatprep.subr.mxu0 %v298_v39 }
  0x15   :  { %891 = vmatpush3.msra.mxu0 %v298_v39 }
  0x16   :  { %910 = vmatprep.subr.mxu0 %v781_v45 }
  0x77   :  { %v152_v9 = vpop.permute.xlu0 %151 }
  0xca   :  { %v864_v8 = vpop.f32.mrf.mxu0 }
  0xcb   :  { %v1074_v10 = vadd.f32 %v864_v8, %v759_v7  ;;  %v778_v8 = vld [vmem:[%s1248_s5 + $0x40] sm:$0xff] }
  0xcc   :  { %v113_v11 = vpop.f32.mrf.mxu0 }
  0xcd   :  { %v1077_v12 = vadd.f32 %v152_v9, %v1074_v10  ;;  %v1079_v13 = vadd.f32 %v759_v7, %v113_v11  ;;  %v126_v60 = vsel %vm122_vm5, %v1074_v10, -inf  ;;  %v770_v7 = vld [vmem:[%s1247_s4 + $0x40] sm:$0xff]  ;;  %v777_v11 = vld [vmem:[%s1248_s5 + $0x38] sm:$0xff] }
  0xcf   :  { %v159_v14 = vmin.f32 %v1077_v12, 20.0  ;;  %960 = vtanh.f32 %v1079_v13  ;;  %v1084_v15 = vadd.f32 %v152_v9, %v1079_v13  ;;  %vm157_vm2 = vcmp.gt.f32.partialorder %v1077_v12, 20.0  ;;  %v769_v9 = vld [vmem:[%s1247_s4 + $0x38] sm:$0xff] }
  0xd0   :  { %v123_v59 = vsel %vm122_vm5, %v1079_v13, -inf }
  0xd1   :  { %v162_v16 = vmul.f32 1.442695, %v159_v14  ;;  %v158_v17 = vmin.f32 %v1084_v15, 20.0  ;;  %vm156_vm4 = vcmp.gt.f32.partialorder %v1084_v15, 20.0  ;;  %v776_v14 = vld [vmem:[%s1248_s5 + $0x30] sm:$0xff] }
  0xd3   :  { %962 = vpow2.f32 %v162_v16  ;;  %v160_v22 = vmul.f32 1.442695, %v158_v17  ;;  %v797_v16 = vld [vmem:[%s1248_s5 + $0x88] sm:$0xff]  ;;  %v788_v17 = vld [vmem:[%s1247_s4 + $0x80] sm:$0xff] }
  0xd5   :  { %964 = vpow2.f32 %v160_v22  ;;  %v794_v22 = vld [vmem:[%s1248_s5 + $0x70] sm:$0xff] }
  0xdc   :  { %v961_v25 = vpop.eup %960 }
  0xdd   :  { %v188_v26 = vmul.f32 0.1, %v961_v25  ;;  %v784_v25 = vld [vmem:[%s1247_s4 + $0x60] sm:$0xff] }
  0xdf   :  { %200 = vrot.lane.b32.xlu1 %v188_v26, %s1003_s26  ;;  %v792_v26 = vld [vmem:[%s1248_s5 + $0x60] sm:$0xff] }
  0xe0   :  { %v963_v27 = vpop.eup %962 }
  0xe1   :  { %v173_v28 = vadd.f32 1.0, %v963_v27  ;;  %v176_v31 = vmul.f32 -0.5, %v963_v27  ;;  %v179_v40 = vand.u32 2147483647, %v963_v27 }
  0xe2   :  { %v965_v29 = vpop.eup %964 }
  0xe3   :  { %966 = vlog2.f32 %v173_v28  ;;  %v164_v30 = vadd.f32 1.0, %v965_v29  ;;  %v167_v34 = vmul.f32 -0.5, %v965_v29  ;;  %v177_v37 = vadd.f32 1.0, %v176_v31 }
  0xe4   :  { %v170_v43 = vand.u32 2147483647, %v965_v29  ;;  %vm180_vm1 = vcmp.lt.f32.partialorder %v179_v40, 0.0004427343 }
  0xe5   :  { %968 = vlog2.f32 %v164_v30  ;;  %v168_v41 = vadd.f32 1.0, %v167_v34  ;;  %v178_v47 = vmul.f32 %v963_v27, %v177_v37 }
  0xe6   :  { %970 = vtanh.f32 %v1074_v10  ;;  %vm171_vm3 = vcmp.lt.f32.partialorder %v170_v43, 0.0004427343 }
  0xe7   :  { %v169_v51 = vmul.f32 %v965_v29, %v168_v41 }
  0xf0   :  { %v967_v42 = vpop.eup %966 }
  0xf1   :  { %v175_v46 = vmul.f32 0.6931472, %v967_v42 }
  0xf2   :  { %v969_v48 = vpop.eup %968 }
  0xf3   :  { %v181_v49 = vsel %vm180_vm1, %v178_v47, %v175_v46  ;;  %v166_v50 = vmul.f32 0.6931472, %v969_v48  ;;  %v971_v57 = vpop.eup %970 }
  0xf4   :  { %v183_v52 = vsel %vm157_vm2, %v1077_v12, %v181_v49  ;;  %v189_v58 = vmul.f32 0.1, %v971_v57  ;;  %v768_v12 = vld [vmem:[%s1247_s4 + $0x30] sm:$0xff] }
  0xf5   :  { %v185_v53 = vadd.f32 0.1, %v183_v52  ;;  %v172_v54 = vsel %vm171_vm3, %v169_v51, %v166_v50 }
  0xf6   :  { %v182_v55 = vsel %vm156_vm4, %v1084_v15, %v172_v54  ;;  %v789_v15 = vld [vmem:[%s1247_s4 + $0x88] sm:$0xff] }
  0xf7   :  { %194 = vrot.lane.b32.xlu1 %v185_v53, %s1004_s17  ;;  %v184_v56 = vadd.f32 0.1, %v182_v55 }
  0xf9   :  { %192 = vrot.lane.b32.xlu0 %v184_v56, %s1004_s17 }
  0xfd   :  { %202 = vrot.lane.b32.xlu0 %v189_v58, %s1003_s26 }
 0x11b   :  { %124 = vmax.xlane.f32.xlu1 %v123_v59 }
 0x11c   :  { %127 = vmax.xlane.f32.xlu0 %v126_v60 }
 0x151   :  { %v201_v61 = vpop.permute.xlu1 %200 }
 0x169   :  { %v195_v0 = vpop.permute.xlu1 %194 }
 0x16b   :  { %v193_v62 = vpop.permute.xlu0 %192 }
 0x16c   :  { %v207_v63 = vsel %vm206_vm6, %v193_v62, %v201_v61 }
 0x16d   :  { %877 = vmatprep.mubr.msk.f32.mxu1 %vm216_vm7, %v207_v63  ;;  %892 = vmatprep.mubr.msk.f32.mxu0 %vm216_vm7, %v207_v63 }
 0x16f   :  { %v203_v1 = vpop.permute.xlu0 %202 }
 0x170   :  { %v1142_v2 = vsel %vm206_vm6, %v195_v0, %v203_v1 }
 0x171   :  { %878 = vmatmul.mubr.msk.f32.vlgmr.msra.gmra.mxu1 %vm216_vm7, %v1142_v2  ;;  %893 = vmatmul.mubr.msk.f32.vlgmr.msra.gmra.mxu0 %vm216_vm7, %v1142_v2 }
 0x172   :  { %896 = vmatpush3.msra.mxu1 %v773_v44  ;;  %911 = vmatpush3.msra.mxu0 %v781_v45  ;;  %v767_v44 = vld [vmem:[%s1249_s6] ss:$0 sm:$0xff]  ;;  %s1005_s6 = smov [#allocation2]  }
 0x173   :  { %897 = vmatprep.subr.mxu1 %v772_v3  ;;  %907 = vmatprep.mubr.msk.f32.mxu1 %vm216_vm7, %v207_v63  ;;  %s748_s3 = sshll.u32 %s1005_s6, 4  ;;  %s749_s3 = int_to_ptr.vmem [resolvable:$true] %s748_s3 }
 0x174   :  { %912 = vmatprep.subr.mxu0 %v780_v4  ;;  %922 = vmatprep.mubr.msk.f32.mxu0 %vm216_vm7, %v207_v63  ;;  %p985_p1 = scmp.lt.s32.totalorder %s749_s3, %s749_s3 }
 0x175   :  { %898 = vmatpush3.msra.mxu1 %v772_v3  ;;  %913 = vmatpush3.msra.mxu0 %v780_v4 }
 0x176   :  { %899 = vmatprep.subr.mxu1 %v771_v5  ;;  %914 = vmatprep.subr.mxu0 %v779_v6 }
 0x177   :  { %900 = vmatpush3.msra.mxu1 %v771_v5  ;;  %915 = vmatpush3.msra.mxu0 %v779_v6 }
 0x178   :  { %901 = vmatprep.subr.mxu1 %v770_v7  ;;  %916 = vmatprep.subr.mxu0 %v778_v8 }
 0x179   :  { %902 = vmatpush3.msra.mxu1 %v770_v7  ;;  %917 = vmatpush3.msra.mxu0 %v778_v8 }
 0x17a   :  { %903 = vmatprep.subr.mxu1 %v769_v9  ;;  %918 = vmatprep.subr.mxu0 %v777_v11 }
 0x17b   :  { %904 = vmatpush3.msra.mxu1 %v769_v9  ;;  %919 = vmatpush3.msra.mxu0 %v777_v11 }
 0x17c   :  { %905 = vmatprep.subr.mxu1 %v768_v12  ;;  %920 = vmatprep.subr.mxu0 %v776_v14 }
 0x17d   :  { %906 = vmatpush3.msra.mxu1 %v768_v12  ;;  %921 = vmatpush3.msra.mxu0 %v776_v14 }
 0x17e   :  { %908 = vmatmul.mubr.msk.f32.vlgmr.msra.gmra.mxu1 %vm216_vm7, %v1142_v2  ;;  %923 = vmatmul.mubr.msk.f32.vlgmr.msra.gmra.mxu0 %vm216_vm7, %v1142_v2 }
 0x17f   :  { %925 = vmatprep.subr.mxu1 %v789_v15  ;;  %940 = vmatprep.subr.mxu0 %v797_v16 }
 0x180   :  { %926 = vmatpush3.msra.mxu1 %v789_v15  ;;  %937 = vmatprep.mubr.msk.f32.mxu1 %vm216_vm7, %v207_v63 }
 0x181   :  { %941 = vmatpush3.msra.mxu0 %v797_v16  ;;  %952 = vmatprep.mubr.msk.f32.mxu0 %vm216_vm7, %v207_v63 }
 0x182   :  { %927 = vmatprep.subr.mxu1 %v788_v17  ;;  %942 = vmatprep.subr.mxu0 %v796_v18 }
 0x183   :  { %928 = vmatpush3.msra.mxu1 %v788_v17  ;;  %943 = vmatpush3.msra.mxu0 %v796_v18 }
 0x184   :  { %929 = vmatprep.subr.mxu1 %v787_v19  ;;  %944 = vmatprep.subr.mxu0 %v795_v20 }
 0x185   :  { %930 = vmatpush3.msra.mxu1 %v787_v19  ;;  %945 = vmatpush3.msra.mxu0 %v795_v20 }
 0x186   :  { %931 = vmatprep.subr.mxu1 %v786_v21  ;;  %946 = vmatprep.subr.mxu0 %v794_v22 }
 0x187   :  { %932 = vmatpush3.msra.mxu1 %v786_v21  ;;  %947 = vmatpush3.msra.mxu0 %v794_v22 }
 0x188   :  { %933 = vmatprep.subr.mxu1 %v785_v23  ;;  %948 = vmatprep.subr.mxu0 %v793_v24 }
 0x189   :  { %934 = vmatpush3.msra.mxu1 %v785_v23  ;;  %949 = vmatpush3.msra.mxu0 %v793_v24 }
 0x18a   :  { %935 = vmatprep.subr.mxu1 %v784_v25  ;;  %950 = vmatprep.subr.mxu0 %v792_v26 }
 0x18b   :  { %936 = vmatpush3.msra.mxu1 %v784_v25  ;;  %951 = vmatpush3.msra.mxu0 %v792_v26 }
 0x18c   :  { %938 = vmatmul.mubr.msk.f32.vlgmr.msra.gmra.mxu1 %vm216_vm7, %v1142_v2  ;;  %953 = vmatmul.mubr.msk.f32.vlgmr.msra.gmra.mxu0 %vm216_vm7, %v1142_v2 }
 0x1a4   :  { %v125_v27 = vpop.xlane.xlu1 %124 }
 0x1a5   :  { %v129_v28 = vsub.f32 %v1079_v13, %v125_v27  ;;  %v128_v29 = vpop.xlane.xlu0 %127 }
 0x1a6   :  { %v130_v30 = vsub.f32 %v1074_v10, %v128_v29 }
 0x1a7   :  { %v131_v31 = vmul.f32 1.442695, %v129_v28 }
 0x1a8   :  { %v133_v32 = vmul.f32 1.442695, %v130_v30 }
 0x1a9   :  { %972 = vpow2.f32 %v131_v31 }
 0x1aa   :  { %974 = vpow2.f32 %v133_v32 }
 0x1b6   :  { %v973_v33 = vpop.eup %972 }
 0x1b7   :  { %v975_v34 = vpop.eup %974  ;;  %v135_v35 = vsel %vm122_vm5, %v973_v33, 0.0 }
 0x1b8   :  { %136 = vadd.xlane.f32.xlu0 %v135_v35  ;;  %v138_v36 = vsel %vm122_vm5, %v975_v34, 0.0 }
 0x1b9   :  { %139 = vadd.xlane.f32.xlu1 %v138_v36 }
 0x231   :  { %v879_v37 = vpop.f32.mrf.mxu1  ;;  %v894_v38 = vpop.f32.mrf.mxu0 }
 0x232   :  { %v380_v43 = vmul.f32 %v894_v38, %v879_v37 }
 0x233   :  { %v289_v39 = vpop.f32.mrf.mxu1  ;;  %v370_v40 = vpop.f32.mrf.mxu0 }
 0x234   :  { %v379_v47 = vmul.f32 %v370_v40, %v289_v39  ;;  %v388_v49 = vadd.f32 %v767_v44, %v380_v43 }
 0x236   :  { %v387_v53 = vadd.f32 %v767_v44, %v379_v47 }
 0x23e   :  { %v909_v41 = vpop.f32.mrf.mxu1  ;;  %v924_v42 = vpop.f32.mrf.mxu0 }
 0x23f   :  { %v554_v48 = vmul.f32 %v924_v42, %v909_v41 }
 0x240   :  { %v462_v45 = vpop.f32.mrf.mxu1  ;;  %v544_v46 = vpop.f32.mrf.mxu0 }
 0x241   :  { %v553_v50 = vmul.f32 %v544_v46, %v462_v45  ;;  %v556_v54 = vadd.f32 %v554_v48, %v388_v49  ;;  %v137_v63 = vpop.xlane.xlu0 %136 }
 0x242   :  { %v140_v62 = vpop.xlane.xlu1 %139 }
 0x243   :  { %v555_v58 = vadd.f32 %v553_v50, %v387_v53  ;;  %976 = vrcp.f32 %v140_v62 }
 0x244   :  { %978 = vrcp.f32 %v137_v63 }
 0x24c   :  { %v939_v51 = vpop.f32.mrf.mxu1  ;;  %v954_v52 = vpop.f32.mrf.mxu0 }
 0x24d   :  { %v722_v55 = vmul.f32 %v954_v52, %v939_v51 }
 0x24e   :  { %v630_v56 = vpop.f32.mrf.mxu1  ;;  %v712_v57 = vpop.f32.mrf.mxu0 }
 0x24f   :  { %v724_v59 = vadd.f32 %v722_v55, %v556_v54  ;;  %v721_v60 = vmul.f32 %v712_v57, %v630_v56 }
 0x250   :  { %v977_v0 = vpop.eup %976 }
 0x251   :  { %v723_v61 = vadd.f32 %v721_v60, %v555_v58  ;;  %729 = vrot.lane.b32.xlu1 %v724_v59, %s1002_s11  ;;  %v979_v1 = vpop.eup %978  ;;  %v144_v2 = vmul.f32 %v977_v0, %v975_v34 }
 0x252   :  { %v143_v3 = vmul.f32 %v979_v1, %v973_v33 }
 0x253   :  { %727 = vrot.lane.b32.xlu0 %v723_v61, %s1002_s11  ;;  %v734_v4 = vsel %vm122_vm5, %v144_v2, %v1074_v10  ;;  %s980_s11 = scalar_lea.vmem %s749_s3, 256 }
 0x254   :  { %v733_v8 = vsel %vm122_vm5, %v143_v3, %v1079_v13  ;;  %p981_p0 = scmp.ne.s32.totalorder %s749_s3, %s980_s11  ;;  %p986_p2 = scmp.lt.s32.totalorder %s980_s11, %s980_s11 }
 0x256   :  { %p987_p3 = por %p986_p2, %p985_p1 }
 0x258   :  { %p988_p4 = pnand %p987_p3, %p981_p0 }
 0x2c3   :  { %v730_v5 = vpop.permute.xlu1 %729 }
 0x2c4   :  { %v737_v6 = vsel %vm735_vm8, %v734_v4, %v730_v5 }
 0x2c5   :  { %v740_v7 = vsel %vm738_vm9, %v737_v6, 0.0  ;;  %v728_v9 = vpop.permute.xlu0 %727 }
 0x2c6   :  { %742 = vst [vmem:[#allocation2 + $0x8] sm:$0xff] %v740_v7  ;;  %v736_v11 = vsel %vm735_vm8, %v733_v8, %v728_v9 }
 0x2c7   :  { %v739_v12 = vsel %vm738_vm9, %v736_v11, 0.0 }
 0x2c8   :  { %741 = vst [vmem:[#allocation2] sm:$0xff] %v739_v12 }
 0x2c9   :  { %991 = shalt.err (!%p988_p4)
}
 0x2ca   :  { %s1006_s16 = smov 128  }
 0x2cb   :  { %754 = dma.vmem_to_hbm [thread:$0]  %s749_s3, 256, %s1250_s7, [#allocation3], %s1006_s16, %s1006_s16, %s1003_s26  }
 0x2cc   :  { %1000 = dma.done.wait [#allocation3], 256  }
 0x2cd   :  { %1001 = vsyncadd [#allocation3], 4294967040 }
 0x2ce   :  { %758 = vsyncpa [#allocation3], 1 }

</bundles_post_ra>
